<compile_context>
chip_gen: v6e
topology: v6e:2x2x1
jax: 0.10.0
libtpu: 0.0.40
codegen_flags: <defaults>
</compile_context>

<pallas_src>
import functools

import jax
import jax.numpy as jnp
from jax.experimental import pallas as pl
from jax.experimental.pallas import tpu as pltpu


_CHUNK_TH = 2048                       # default hidden tile for the chunked fallback
_MIN_SPLIT_TILE_BYTES = 2 * 1024 * 1024  # only split >=4-way if each block moves >= this


def _vmem_budget():
    """Per-generation scoped-VMEM limit and rep-slab budget (bytes)."""
    phys = None
    try:
        info = pltpu.get_tpu_info()
        phys = getattr(info, "vmem_capacity_bytes", None)
    except Exception:
        phys = None
    if not phys or phys <= 0:
        phys = 64 * 1024 * 1024            # conservative (v7x-sized) fallback
    # v7x (64 MiB phys) -> 32 MiB limit / 16 MiB slab; v5e/v6e (128 MiB) -> 64 / 32.
    limit = min(phys // 2, 64 * 1024 * 1024)
    slab = limit // 2
    return limit, slab


def _svdd_full_kernel(rep_ref, c_ref, out_ref):
    """Full-hidden-dim path: rep tile (tb, H), c resident (1, H) f32, out (tb, 1)."""
    diff = rep_ref[...].astype(jnp.float32) - c_ref[...]
    out_ref[...] = jnp.sum(diff * diff, axis=1, keepdims=True)


def _make_chunked_kernel(H, th, num_h_blocks):
    """Fallback for very large H: grid axis 1 walks hidden-dim chunks of width th."""
    n_strips = th // 128
    rem = H - (num_h_blocks - 1) * th          # valid columns in the last hidden block

    def kernel(rep_ref, c_ref, out_ref, acc_ref):
        h = pl.program_id(1)

        @pl.when(h == 0)
        def _():
            acc_ref[...] = jnp.zeros_like(acc_ref)

        acc = acc_ref[...]
        col0 = h * th
        # Fused strip loop: only (tb, 128) f32 temporaries are ever live.
        for j in range(n_strips):
            lo, hi = j * 128, (j + 1) * 128
            d = rep_ref[:, lo:hi].astype(jnp.float32) - c_ref[:, lo:hi]
            sq = d * d
            if hi > rem:
                # This strip can contain padded columns (only in the last block).
                col = jax.lax.broadcasted_iota(jnp.int32, sq.shape, 1) + (col0 + lo)
                sq = jnp.where(col < H, sq, 0.0)
            acc = acc + sq
        acc_ref[...] = acc

        @pl.when(h == pl.num_programs(1) - 1)
        def _():
            out_ref[...] = jnp.sum(acc_ref[...], axis=1, keepdims=True)

    return kernel


def _round_up(x, m):
    return ((x + m - 1) // m) * m


def _pick_batch_tile(B, row_eff_bytes, row_hbm_bytes, sub, slab_bytes):
    """Largest batch tile (multiple of `sub`) whose effective per-step VMEM
    footprint fits the slab budget; keep >= 4 batch blocks (2 per TensorCore
    on v7x, so DMA overlaps compute) when each block still moves a useful
    amount of data, else >= 2 blocks."""
    tb = (slab_bytes // row_eff_bytes) // sub * sub
    tb = max(sub, tb)
    tb = min(tb, _round_up(B, sub))

    tb4 = _round_up(pl.cdiv(B, 4), sub)
    tb2 = _round_up(pl.cdiv(B, 2), sub)
    if B >= 4 * sub and tb4 * row_hbm_bytes >= _MIN_SPLIT_TILE_BYTES:
        tb = min(tb, tb4)
    elif B >= 2 * sub:
        tb = min(tb, tb2)
    return max(sub, tb)


@functools.partial(jax.jit, static_argnames=("reduction", "hidden_tile"))
def dsvdd_loss(rep, c, reduction="mean", hidden_tile=None):
    """Deep SVDD loss.  rep: (B, H), c: (H,)."""
    B, H = rep.shape
    # Pre-cast the center to f32 once (kernel never re-casts it per grid step).
    c2d = c.reshape(1, H).astype(jnp.float32)

    itemsize = jnp.dtype(rep.dtype).itemsize
    sub = max(8, 32 // itemsize)           # sublane multiple: 8 f32 / 16 bf16 / 32 i8

    vmem_limit, slab = _vmem_budget()

    # Effective per-row VMEM footprint on the full-H path: double-buffered rep
    # tile (2*itemsize) plus the f32 diff/square temporaries (~8 B/elem).
    row_eff_full = H * (2 * itemsize + 8)
    row_hbm_full = H * itemsize

    full_h_fits = sub * row_eff_full <= slab
    use_full_h = full_h_fits and (hidden_tile is None or hidden_tile >= H)

    compiler_params = pltpu.CompilerParams(
        dimension_semantics=("parallel",) if use_full_h else ("parallel", "arbitrary"),
        vmem_limit_bytes=vmem_limit,
    )

    if use_full_h:
        tb = _pick_batch_tile(B, row_eff_full, row_hbm_full, sub, slab)
        per_sample = pl.pallas_call(
            _svdd_full_kernel,
            out_shape=jax.ShapeDtypeStruct((B, 1), jnp.float32),
            grid=(pl.cdiv(B, tb),),
            in_specs=[
                pl.BlockSpec((tb, H), lambda i: (i, 0)),
                pl.BlockSpec((1, H), lambda i: (0, 0)),      # c fully resident
            ],
            out_specs=pl.BlockSpec((tb, 1), lambda i: (i, 0)),
            compiler_params=compiler_params,
        )(rep, c2d)
    else:
        th = hidden_tile if hidden_tile is not None else _CHUNK_TH
        th = max(128, (th // 128) * 128)                     # multiple of 128
        if H >= 128:
            th = min(th, (H // 128) * 128)
        num_h = pl.cdiv(H, th)
        # Strip-fused path: per-step footprint is the double-buffered rep tile
        # plus a handful of (tb, 128) f32 temporaries / the acc scratch.
        row_eff = th * 2 * itemsize + 4096
        tb = _pick_batch_tile(B, row_eff, th * itemsize, sub, slab)
        per_sample = pl.pallas_call(
            _make_chunked_kernel(H, th, num_h),
            out_shape=jax.ShapeDtypeStruct((B, 1), jnp.float32),
            grid=(pl.cdiv(B, tb), num_h),
            in_specs=[
                pl.BlockSpec((tb, th), lambda i, k: (i, k)),
                pl.BlockSpec((1, th), lambda i, k: (0, k)),
            ],
            out_specs=pl.BlockSpec((tb, 1), lambda i, k: (i, 0)),
            scratch_shapes=[pltpu.VMEM((tb, 128), jnp.float32)],
            compiler_params=compiler_params,
        )(rep, c2d)

    per_sample = per_sample[:, 0]  # (B,)

    if reduction == "mean":
        return jnp.mean(per_sample)
    elif reduction == "sum":
        return jnp.sum(per_sample)
    elif reduction == "none":
        return per_sample
    else:
        raise ValueError(f"unknown reduction: {reduction}")


if __name__ == "__main__":
    key = jax.random.PRNGKey(0)
    k_rep, k_c, k_rep2, k_c2 = jax.random.split(key, 4)

    # Small aligned case: batch=8, hidden=32 (full-H fast path).
    B, H = 8, 32
    rep = jax.random.normal(k_rep, (B, H), dtype=jnp.float32)
    c = jax.random.normal(k_c, (H,), dtype=jnp.float32)

    ref_per_sample = jnp.sum((rep - c) ** 2, axis=1)

    out_mean = jax.block_until_ready(dsvdd_loss(rep, c, reduction="mean"))
    out_sum = jax.block_until_ready(dsvdd_loss(rep, c, reduction="sum"))
    out_none = jax.block_until_ready(dsvdd_loss(rep, c, reduction="none"))

    assert jnp.allclose(out_none, ref_per_sample, rtol=1e-5, atol=1e-5)
    assert jnp.allclose(out_mean, jnp.mean(ref_per_sample), rtol=1e-5, atol=1e-5)
    assert jnp.allclose(out_sum, jnp.sum(ref_per_sample), rtol=1e-5, atol=1e-5)

    # Unaligned batch / hidden dims (partial batch tile) on the full-H path.
    B2, H2 = 10, 50
    rep2 = jax.random.normal(k_rep2, (B2, H2), dtype=jnp.float32)
    c2 = jax.random.normal(k_c2, (H2,), dtype=jnp.float32)
    ref2 = jnp.sum((rep2 - c2) ** 2, axis=1)
    out2 = jax.block_until_ready(dsvdd_loss(rep2, c2, reduction="none"))
    assert jnp.allclose(out2, ref2, rtol=1e-5, atol=1e-5)

    # Exercise the chunked-H fallback (strip-fused accumulator + tail masking)
    # by forcing a small hidden tile.
    B3, H3 = 16, 200
    rep3 = jax.random.normal(k_rep, (B3, H3), dtype=jnp.float32)
    c3 = jax.random.normal(k_c, (H3,), dtype=jnp.float32)
    ref3 = jnp.sum((rep3 - c3) ** 2, axis=1)
    out3 = jax.block_until_ready(dsvdd_loss(rep3, c3, reduction="none", hidden_tile=128))
    assert jnp.allclose(out3, ref3, rtol=1e-4, atol=1e-4)

    # bf16 input (f32-upcast accounting path): compare against an f32 reference.
    rep4 = rep.astype(jnp.bfloat16)
    ref4 = jnp.sum((rep4.astype(jnp.float32) - c) ** 2, axis=1)
    out4 = jax.block_until_ready(dsvdd_loss(rep4, c, reduction="none"))
    assert jnp.allclose(out4, ref4, rtol=2e-2, atol=2e-2)

    print("KERNEL_OK")
</pallas_src>

<mosaic_0001>
module attributes {stable_mosaic.version = 11 : i64} {
  func.func @_svdd_full_kernel(%arg0: i32, %arg1: memref<8x32xf32, #tpu.memory_space<vmem>>, %arg2: memref<1x32xf32, #tpu.memory_space<vmem>>, %arg3: memref<8x1xf32, #tpu.memory_space<vmem>>) attributes {dimension_semantics = [#tpu.dimension_semantics<parallel>], iteration_bounds = array<i64: 1>, scalar_prefetch = 0 : i64, scratch_operands = 0 : i64, tpu.core_type = #tpu.core_type<tc>, window_params = [{transform_indices = @transform_0, window_bounds = array<i64: 8, 32>}, {pipeline_mode = #tpu.pipeline_mode<synchronous>, transform_indices = @transform_1, window_bounds = array<i64: 1, 32>}, {transform_indices = @transform_2, window_bounds = array<i64: 8, 1>}]} {
    %c0 = arith.constant 0 : index
    %c0_0 = arith.constant 0 : index
    %0 = vector.load %arg1[%c0, %c0_0] : memref<8x32xf32, #tpu.memory_space<vmem>>, vector<8x32xf32>
    %c0_1 = arith.constant 0 : index
    %c0_2 = arith.constant 0 : index
    %1 = vector.load %arg2[%c0_1, %c0_2] : memref<1x32xf32, #tpu.memory_space<vmem>>, vector<1x32xf32>
    %2 = vector.broadcast %1 : vector<1x32xf32> to vector<8x32xf32>
    %3 = arith.subf %0, %2 : vector<8x32xf32>
    %4 = arith.mulf %3, %3 : vector<8x32xf32>
    %cst = arith.constant dense<0.000000e+00> : vector<8xf32>
    %5 = vector.multi_reduction <add>, %4, %cst [1] : vector<8x32xf32> to vector<8xf32>
    %6 = vector.shape_cast %5 : vector<8xf32> to vector<8x1xf32>
    %c0_3 = arith.constant 0 : index
    %c0_4 = arith.constant 0 : index
    %7 = vector.load %arg3[%c0_3, %c0_4] : memref<8x1xf32, #tpu.memory_space<vmem>>, vector<8x1xf32>
    tpu.vector_store %arg3[%c0_3, %c0_4], %6 {strides = array<i32>} : memref<8x1xf32, #tpu.memory_space<vmem>>, vector<8x1xf32>,
    return
  }
  func.func @transform_0(%arg0: i32) -> (i32, i32) {
    %c0_i32 = arith.constant 0 : i32
    %c0_i32_0 = arith.constant 0 : i32
    return %arg0, %c0_i32 : i32, i32
  }
  func.func @transform_1(%arg0: i32) -> (i32, i32) {
    %c0_i32 = arith.constant 0 : i32
    %c0_i32_0 = arith.constant 0 : i32
    %c0_i32_1 = arith.constant 0 : i32
    return %c0_i32, %c0_i32_0 : i32, i32
  }
  func.func @transform_2(%arg0: i32) -> (i32, i32) {
    %c0_i32 = arith.constant 0 : i32
    %c0_i32_0 = arith.constant 0 : i32
    return %arg0, %c0_i32 : i32, i32
  }
}

</mosaic_0001>

<bundles_post_ra>
// kernel: dsvdd_loss.1
= control target key start
LH: loop header
LB: loop body
LE: loop exit
PB: predicated region body
PF: predicated region fallthrough
CT: control target
= control target key end

     0   :  { %7 = vsyncpa [#allocation3], 0  ;;  %s68_s9 = smov [#allocation2]   ;;  %s93_s0 = inlined_call_operand.hbm [shape: f32[8,32], index: 0, kind: input, shape index: {}]   ;;  %s94_s1 = inlined_call_operand.vmem [shape: f32[1,32], index: 1, kind: input, shape index: {}]   ;;  %s95_s2 = inlined_call_operand.vmem [shape: f32[8,1], index: 2, kind: output, shape index: {}]  }
   0x1   :  { %s14_s10 = sshll.u32 %s68_s9, 4  ;;  %s15_s10 = int_to_ptr.vmem [resolvable:$true] %s14_s10 }
   0x2   :  { %s54_s11 = scalar_lea.vmem %s15_s10, 128  ;;  %p59_p1 = scmp.lt.s32.totalorder %s15_s10, %s15_s10 }
   0x3   :  { %p55_p0 = scmp.ne.s32.totalorder %s15_s10, %s54_s11  ;;  %p60_p2 = scmp.lt.s32.totalorder %s54_s11, %s54_s11 }
   0x5   :  { %p61_p3 = por %p60_p2, %p59_p1 }
   0x7   :  { %p62_p4 = pnand %p61_p3, %p55_p0 }
   0x9   :  { %65 = shalt.err (!%p62_p4)
}
   0xa   :  { %17 = dma.hbm_to_vmem [thread:$0]  %s93_s0, 128, %s15_s10, [#allocation3]  }
   0xb   :  { %66 = dma.done.wait [#allocation3], 128  }
   0xc   :  { %67 = vsyncadd [#allocation3], 4294967168  ;;  %v23_v0 = vld [vmem:[#allocation2] sm:$0xff]  ;;  %vm33_vm0 = vcmask 261120   ;;  %vm37_vm1 = vcmask 7168  }
   0xd   :  { %v44_v1 = vld [vmem:[%s94_s1] ss:$0 sm:$0xff] }
   0xe   :  { %v31_v2 = vsub.f32 %v23_v0, %v44_v1 }
  0x10   :  { %v32_v3 = vmul.f32 %v31_v2, %v31_v2 }
  0x12   :  { %v34_v4 = vsel %vm33_vm0, %v32_v3, 0.0 }
  0x13   :  { %35 = vadd.xlane.f32.xlu0 %v34_v4 }
  0x9c   :  { %v36_v5 = vpop.xlane.xlu0 %35 }
  0x9d   :  { %38 = vst.msk [vmem:[%s95_s2] sm:$0xff] %vm37_vm1, %v36_v5 }
  0x9e   :  { %43 = vsyncpa [#allocation3], 1 }

</bundles_post_ra>
